<compile_context>
chip_gen: v5e
topology: v5e:2x2
jax: 0.10.0
libtpu: 0.0.40
codegen_flags: <defaults>
</compile_context>

<pallas_src>
import jax
import jax.numpy as jnp
from jax.experimental import pallas as pl
from jax.experimental.pallas import tpu as pltpu

_LANE = 128  # vreg lane width


def _cdiv(a, b):
    return (a + b - 1) // b


def _round_up(v, m):
    return _cdiv(v, m) * m


def _normalize_kernel(x_ref, scale_ref, bias_ref, o_ref):
    # x_ref: (BR, BC) lane-dense tile.
    # scale_ref / bias_ref: (BR, 1) per-row, or (1, BC) per-column — either
    # broadcasts cleanly against the tile. Two VPU ops per element, no divide.
    o_ref[...] = (x_ref[...] * scale_ref[...] + bias_ref[...]).astype(o_ref.dtype)


def _tpu_budget():
    """Return (target_block_bytes, vmem_limit_bytes, min_grid_steps) for the
    current TPU generation. Falls back to conservative (v7x-safe) values."""
    vmem_cap = None
    try:
        vmem_cap = int(pltpu.get_tpu_info().vmem_capacity_bytes)
    except Exception:
        try:
            kind = jax.devices()[0].device_kind.lower()
            if "v5" in kind or "v6" in kind:
                vmem_cap = 128 * 1024 * 1024
            else:
                vmem_cap = 64 * 1024 * 1024
        except Exception:
            vmem_cap = 64 * 1024 * 1024

    if vmem_cap >= 96 * 1024 * 1024:
        # v5e / v6e: 128 MiB physical VMEM, single TensorCore.
        # ~8 MiB blocks, double-buffered in+out ~= 32 MiB << 56 MiB limit.
        return 8 * 1024 * 1024, 56 * 1024 * 1024, 1
    # v7x-class: 64 MiB physical / 32 MiB scoped VMEM, 2 TensorCores.
    # ~5 MiB blocks (double-buffered I/O ~= 20 MiB) and keep >= 8 grid steps
    # so the "parallel" grid axes can shard across both cores.
    return 5 * 1024 * 1024, 28 * 1024 * 1024, 8


def _choose_block(R, Cols, elem_bytes, target_bytes, min_steps):
    """Pick a lane-dense (block_rows, block_cols) tile of ~target_bytes that
    satisfies the (sublane, 128) tiling constraint (or uses full extents)."""
    # Dtype-aware sublane count: f32 -> 8, bf16 -> 16, int8/u8 -> 32.
    sublane = max(8, (8 * 4) // max(1, elem_bytes))
    target_elems = max(1, target_bytes // elem_bytes)

    # Whole array fits in one block -> single grid step, no pipelining.
    if R * Cols <= target_elems:
        return R, Cols

    # Lane (last) dim: multiple of 128, or full extent for tiny widths.
    if Cols <= _LANE:
        block_cols = Cols
    else:
        max_cols = max(_LANE, (max(1, target_elems // sublane) // _LANE) * _LANE)
        cols_padded = _round_up(Cols, _LANE)
        # Prefer one column-block per row (only tail lanes masked) if affordable.
        block_cols = cols_padded if cols_padded <= max_cols else max_cols

    # Sublane (second-to-last) dim: multiple of `sublane`, or full extent.
    rows = max(1, target_elems // block_cols)
    block_rows = R if rows >= R else max(sublane, (rows // sublane) * sublane)

    # Keep enough grid steps for 2-TC megacore sharding (matters on v7x).
    while _cdiv(R, block_rows) * _cdiv(Cols, block_cols) < min_steps:
        if block_rows > sublane:
            new_rows = max(sublane, ((block_rows // 2) // sublane) * sublane)
            if new_rows == block_rows:
                break
            block_rows = new_rows
        elif block_cols > _LANE:
            new_cols = max(_LANE, ((block_cols // 2) // _LANE) * _LANE)
            if new_cols == block_cols:
                break
            block_cols = new_cols
        else:
            break
    return block_rows, block_cols


def normalize(x, mean, std):
    """(x - mean) / std, matching PyTorch Normalize semantics.

    x:    (N, C, H, W)
    mean: per-channel, reshapeable to (C,) (e.g. (1, C, 1, 1))
    std:  per-channel, same
    """
    N, C, H, W = x.shape
    HW = H * W
    elem_bytes = jnp.dtype(x.dtype).itemsize
    # PyTorch Normalize requires float tensors; promote integer inputs to f32.
    out_dtype = x.dtype if jnp.issubdtype(x.dtype, jnp.floating) else jnp.float32
    out_bytes = jnp.dtype(out_dtype).itemsize

    # One-time fused affine parameters (exact f32 division, done once).
    scale_c = (1.0 / std.astype(jnp.float32)).reshape(C)
    bias_c = (-(mean.astype(jnp.float32) / std.astype(jnp.float32))).reshape(C)

    target_block_bytes, vmem_limit, min_steps = _tpu_budget()

    if HW >= _LANE:
        # Lane-dense (N*C, H*W) slab; per-row (1/std, -mean/std) columns whose
        # block index only changes with the row axis (re-DMA is skipped on most
        # steps and they are tiny anyway).
        R, Cols = N * C, HW
        x2 = x.reshape(R, Cols)
        scale = jnp.tile(scale_c, N).reshape(R, 1)
        bias = jnp.tile(bias_c, N).reshape(R, 1)
        block_rows, block_cols = _choose_block(
            R, Cols, elem_bytes, target_block_bytes, min_steps
        )
        sb_shape = (block_rows, 1)
        sb_index = lambda i, j: (i, 0)
    else:
        # Tiny spatial dims: fold channels into the lane axis so stores stay as
        # lane-dense as possible; scale/bias become (1, C*HW) row vectors whose
        # broadcast is a cheap stride-0 sublane broadcast.
        R, Cols = N, C * HW
        x2 = x.reshape(R, Cols)
        scale = jnp.repeat(scale_c, HW).reshape(1, Cols)
        bias = jnp.repeat(bias_c, HW).reshape(1, Cols)
        block_rows, block_cols = _choose_block(
            R, Cols, elem_bytes, target_block_bytes, min_steps
        )
        sb_shape = (1, block_cols)
        sb_index = lambda i, j: (0, j)

    grid = (_cdiv(R, block_rows), _cdiv(Cols, block_cols))

    cost = pl.CostEstimate(
        flops=2 * R * Cols,  # one mul + one add per element
        transcendentals=0,
        bytes_accessed=R * Cols * (elem_bytes + out_bytes)
        + (scale.size + bias.size) * 4,
    )

    out2 = pl.pallas_call(
        _normalize_kernel,
        out_shape=jax.ShapeDtypeStruct((R, Cols), out_dtype),
        grid_spec=pltpu.PrefetchScalarGridSpec(
            num_scalar_prefetch=0,
            grid=grid,
            in_specs=[
                pl.BlockSpec((block_rows, block_cols), lambda i, j: (i, j)),
                pl.BlockSpec(sb_shape, sb_index),
                pl.BlockSpec(sb_shape, sb_index),
            ],
            out_specs=pl.BlockSpec((block_rows, block_cols), lambda i, j: (i, j)),
        ),
        compiler_params=pltpu.CompilerParams(
            dimension_semantics=("parallel", "parallel"),
            vmem_limit_bytes=vmem_limit,
        ),
        cost_estimate=cost,
        # TODO(synk): expose input_output_aliases={0: 0} for callers that donate x.
    )(x2, scale, bias)

    return out2.reshape(N, C, H, W)


if __name__ == "__main__":
    # Deterministic "buffers": standard ImageNet stats (module fixes C=3).
    mean = jnp.array([0.485, 0.456, 0.406], dtype=jnp.float32).reshape(1, 3, 1, 1)
    std = jnp.array([0.229, 0.224, 0.225], dtype=jnp.float32).reshape(1, 3, 1, 1)

    key = jax.random.PRNGKey(0)

    # Main path: N=2, C=3, H=W=16 (H*W = 256 >= 128 -> lane-dense row slab).
    x = jax.random.uniform(key, (2, 3, 16, 16), dtype=jnp.float32)
    out = jax.block_until_ready(normalize(x, mean, std))
    ref = (x - mean) / std
    assert out.shape == x.shape and out.dtype == x.dtype
    assert jnp.allclose(out, ref, atol=1e-5, rtol=1e-5), float(
        jnp.max(jnp.abs(out - ref))
    )

    # Tiny-spatial fallback path: H=W=4 (H*W = 16 < 128 -> (N, C*HW) layout).
    x_small = jax.random.uniform(jax.random.PRNGKey(0), (2, 3, 4, 4), jnp.float32)
    out_small = jax.block_until_ready(normalize(x_small, mean, std))
    ref_small = (x_small - mean) / std
    assert jnp.allclose(out_small, ref_small, atol=1e-5, rtol=1e-5)

    print("KERNEL_OK")
</pallas_src>

<mosaic_0001>
module attributes {stable_mosaic.version = 11 : i64} {
  func.func @_normalize_kernel(%arg0: i32, %arg1: i32, %arg2: memref<6x256xf32, #tpu.memory_space<vmem>>, %arg3: memref<6x1xf32, #tpu.memory_space<vmem>>, %arg4: memref<6x1xf32, #tpu.memory_space<vmem>>, %arg5: memref<6x256xf32, #tpu.memory_space<vmem>>) attributes {dimension_semantics = [#tpu.dimension_semantics<parallel>, #tpu.dimension_semantics<parallel>], iteration_bounds = array<i64: 1, 1>, scalar_prefetch = 0 : i64, scratch_operands = 0 : i64, tpu.core_type = #tpu.core_type<tc>, window_params = [{transform_indices = @transform_0, window_bounds = array<i64: 6, 256>}, {transform_indices = @transform_1, window_bounds = array<i64: 6, 1>}, {transform_indices = @transform_2, window_bounds = array<i64: 6, 1>}, {transform_indices = @transform_3, window_bounds = array<i64: 6, 256>}]} {
    %c0 = arith.constant 0 : index
    %c0_0 = arith.constant 0 : index
    %0 = vector.load %arg2[%c0, %c0_0] : memref<6x256xf32, #tpu.memory_space<vmem>>, vector<6x256xf32>
    %c0_1 = arith.constant 0 : index
    %c0_2 = arith.constant 0 : index
    %1 = vector.load %arg3[%c0_1, %c0_2] : memref<6x1xf32, #tpu.memory_space<vmem>>, vector<6x1xf32>
    %2 = vector.broadcast %1 : vector<6x1xf32> to vector<6x256xf32>
    %3 = arith.mulf %0, %2 : vector<6x256xf32>
    %c0_3 = arith.constant 0 : index
    %c0_4 = arith.constant 0 : index
    %4 = vector.load %arg4[%c0_3, %c0_4] : memref<6x1xf32, #tpu.memory_space<vmem>>, vector<6x1xf32>
    %5 = vector.broadcast %4 : vector<6x1xf32> to vector<6x256xf32>
    %6 = arith.addf %3, %5 : vector<6x256xf32>
    %c0_5 = arith.constant 0 : index
    %c0_6 = arith.constant 0 : index
    %7 = vector.load %arg5[%c0_5, %c0_6] : memref<6x256xf32, #tpu.memory_space<vmem>>, vector<6x256xf32>
    tpu.vector_store %arg5[%c0_5, %c0_6], %6 {strides = array<i32>} : memref<6x256xf32, #tpu.memory_space<vmem>>, vector<6x256xf32>,
    return
  }
  func.func @transform_0(%arg0: i32, %arg1: i32) -> (i32, i32) {
    %c0_i32 = arith.constant 0 : i32
    return %arg0, %arg1 : i32, i32
  }
  func.func @transform_1(%arg0: i32, %arg1: i32) -> (i32, i32) {
    %c0_i32 = arith.constant 0 : i32
    %c0_i32_0 = arith.constant 0 : i32
    return %arg0, %c0_i32 : i32, i32
  }
  func.func @transform_2(%arg0: i32, %arg1: i32) -> (i32, i32) {
    %c0_i32 = arith.constant 0 : i32
    %c0_i32_0 = arith.constant 0 : i32
    return %arg0, %c0_i32 : i32, i32
  }
  func.func @transform_3(%arg0: i32, %arg1: i32) -> (i32, i32) {
    %c0_i32 = arith.constant 0 : i32
    return %arg0, %arg1 : i32, i32
  }
}

</mosaic_0001>

<bundles_post_ra>
// kernel: tpu_custom_call.1
= control target key start
LH: loop header
LB: loop body
LE: loop exit
PB: predicated region body
PF: predicated region fallthrough
CT: control target
= control target key end

     0   :  { %v80_v1 = vmov 0   ;;  %s117_s0 = inlined_call_operand.vmem [shape: f32[6,256], index: 0, kind: input, shape index: {}]   ;;  %s118_s1 = inlined_call_operand.vmem [shape: f32[6,1], index: 1, kind: input, shape index: {}]   ;;  %s119_s2 = inlined_call_operand.vmem [shape: f32[6,1], index: 2, kind: input, shape index: {}]   ;;  %s120_s3 = inlined_call_operand.hbm [shape: f32[6,256], index: 3, kind: output, shape index: {}]  }
   0x1   :  { %v17_v0 = vld [vmem:[%s118_s1] sm:$0x3f]  ;;  %53 = vset.pattern.permute.xlu0 %v80_v1 }
   0x2   :  { %8 = vsyncpa [#allocation3], 0  ;;  %20 = vperm.xlu0 %53, %v17_v0   ;;  %v25_v2 = vld [vmem:[%s119_s2] sm:$0x3f]  ;;  %v16_v5 = vld [vmem:[%s117_s0 + $0x8] sm:$0x3f] }
   0x3   :  { %v15_v4 = vld [vmem:[%s117_s0] sm:$0x3f]  ;;  %s81_s1 = smov [#allocation2]   ;;  %s42_s23 = sshll.u32 %s120_s3, 4  ;;  %s43_s23 = int_to_ptr.hbm [resolvable:$true] %s42_s23 }
   0x4   :  { %s40_s20 = sshll.u32 %s81_s1, 4  ;;  %s41_s20 = int_to_ptr.vmem [resolvable:$true] %s40_s20 }
   0xa   :  { %28 = vperm.xlu0 %53, %v25_v2  }
  0x74   :  { %v21_v3 = vpop.permute.xlu0 %20 }
  0x75   :  { %v23_v6 = vmul.f32 %v21_v3, %v15_v4  ;;  %v24_v7 = vmul.f32 %v21_v3, %v16_v5 }
  0x7c   :  { %v29_v8 = vpop.permute.xlu0 %28 }
  0x7d   :  { %v31_v9 = vadd.f32 %v29_v8, %v23_v6  ;;  %v32_v10 = vadd.f32 %v29_v8, %v24_v7 }
  0x7f   :  { %33 = vst [vmem:[#allocation2] sm:$0x3f] %v31_v9 }
  0x80   :  { %34 = vst [vmem:[#allocation2 + $0x8] sm:$0x3f] %v32_v10 }
  0x81   :  { %45 = dma.vmem_to_hbm [thread:$0]  %s41_s20, 256, %s43_s23, [#allocation3]  }
  0x82   :  { %78 = dma.done.wait [#allocation3], 256  }
  0x83   :  { %79 = vsyncadd [#allocation3], 4294967040 }
  0x84   :  { %50 = vsyncpa [#allocation3], 1 }

</bundles_post_ra>
